<compile_context>
chip_gen: v7x
topology: tpu7x:2x2x1
jax: 0.10.0
libtpu: 0.0.40
codegen_flags: <defaults>
</compile_context>

<pallas_src>
import jax
import jax.numpy as jnp
from jax.experimental import pallas as pl
from jax.experimental.pallas import tpu as pltpu


def _round_up(x, m):
    return (x + m - 1) // m * m


def _pred_kernel(last_c_ref, w1_ref, b1_ref, w2_ref, b2_ref, out_ref):
    # last_c_ref: [tb, C]              last-timestep context tile
    # w1_ref    : [C, num_steps*H]     per-step first-layer weights, lane-concat
    # b1_ref    : [1, num_steps*H]
    # w2_ref    : [num_steps, H, T]    un-padded per-step second-layer weights
    # b2_ref    : [1, num_steps*T]
    # out_ref   : [tb, out_pad]        lane-dense (x128) output slab
    x = last_c_ref[...]

    # First layer: one MXU pass covering every step (steps packed on N axis).
    h = jnp.dot(x, w1_ref[...], preferred_element_type=jnp.float32)
    h = h + b1_ref[...].astype(jnp.float32)
    h = jnp.maximum(h, 0.0)                                   # ReLU, f32 activations

    num_steps, H, T = w2_ref.shape

    # Second layer: unrolled per-step dots (no block-diagonal zero padding).
    # At real dims (H, T multiples of 128) these slices are lane-aligned.
    ys = []
    for s in range(num_steps):
        h_s = h[:, s * H:(s + 1) * H]                         # [tb, H], static slice
        ys.append(jnp.dot(h_s, w2_ref[s], preferred_element_type=jnp.float32))
    y = jnp.concatenate(ys, axis=-1) + b2_ref[...].astype(jnp.float32)  # [tb, S*T]

    # Pad to the lane-dense slab width and store once (unmasked vst).
    pad = out_ref.shape[-1] - y.shape[-1]
    if pad > 0:
        y = jnp.concatenate([y, jnp.zeros((y.shape[0], pad), y.dtype)], axis=-1)
    out_ref[...] = y.astype(out_ref.dtype)


def pack_params(w1, b1, w2, b2):
    """One-time parameter packing (do at init / cache as a jit constant).

    w1: [num_steps, C, H] -> [C, num_steps*H]   (steps concatenated on lanes)
    b1: [num_steps, H]    -> [1, num_steps*H]
    w2: [num_steps, H, T] -> unchanged (no block-diagonal inflation)
    b2: [num_steps, T]    -> [1, num_steps*T]
    """
    num_steps, C, H = w1.shape
    T = w2.shape[-1]
    w1_flat = jnp.transpose(w1, (1, 0, 2)).reshape(C, num_steps * H)
    b1_flat = b1.reshape(1, num_steps * H)
    b2_flat = b2.reshape(1, num_steps * T)
    return w1_flat, b1_flat, w2, b2_flat


def prediction_network_forward(c, packed_params):
    """PredictionNetwork forward pass.

    Args:
      c: [B, S, context_dim] context vectors.
      packed_params: output of pack_params(w1, b1, w2, b2).

    Returns:
      [num_steps, B, target_dim] stacked predictions; index step s to recover
      the per-step tensor the PyTorch module returns in its list.
    """
    w1_flat, b1_flat, w2, b2_flat = packed_params
    B, S, C = c.shape
    num_steps, H, T = w2.shape

    # Wrapper-side slice: only the last timestep ever reaches the kernel, so the
    # context DMA is [B, C] instead of [B, S, C].
    last_c = c[:, -1, :]

    out_width = num_steps * T
    out_pad = _round_up(out_width, 128)

    # Batch tiling: single invocation for small B, parallel grid over B tiles
    # once B is large (lets v7x use both TensorCores; no-op on v5e/v6e).
    tb = B if B <= 512 else 256
    grid = (pl.cdiv(B, tb),)

    # Scoped-VMEM budget from the actual footprint (+4x headroom, 2 MiB floor)
    # instead of reserving the full default -- avoids squeezing neighbouring
    # fusions, which matters most on v7x's 64 MiB physical VMEM.
    param_bytes = sum(int(a.size) * a.dtype.itemsize
                      for a in (w1_flat, b1_flat, w2, b2_flat))
    io_bytes = tb * C * last_c.dtype.itemsize + tb * out_pad * c.dtype.itemsize
    vmem_limit = max(2 * 1024 * 1024, 4 * (param_bytes + io_bytes))

    out = pl.pallas_call(
        _pred_kernel,
        out_shape=jax.ShapeDtypeStruct((B, out_pad), c.dtype),
        grid=grid,
        in_specs=[
            pl.BlockSpec((tb, C), lambda i: (i, 0)),                     # last_c tile
            pl.BlockSpec((C, num_steps * H), lambda i: (0, 0)),          # w1 (resident)
            pl.BlockSpec((1, num_steps * H), lambda i: (0, 0)),          # b1 (resident)
            pl.BlockSpec((num_steps, H, T), lambda i: (0, 0, 0)),        # w2 (resident)
            pl.BlockSpec((1, num_steps * T), lambda i: (0, 0)),          # b2 (resident)
        ],
        out_specs=pl.BlockSpec((tb, out_pad), lambda i: (i, 0)),
        compiler_params=pltpu.CompilerParams(
            dimension_semantics=("parallel",),
            vmem_limit_bytes=int(vmem_limit),
        ),
    )(last_c, w1_flat, b1_flat, w2, b2_flat)

    # [B, out_pad] -> valid slab -> [num_steps, B, T] (layout plumbing only).
    out = out[:, :out_width].reshape(B, num_steps, T)
    return jnp.transpose(out, (1, 0, 2))


def init_params(key, context_dim, target_dim, hidden_dim, num_steps, dtype=jnp.float32):
    """Deterministic synthetic parameters (nn.Linear weights, transposed)."""
    ks = jax.random.split(key, 4)
    w1 = jax.random.normal(ks[0], (num_steps, context_dim, hidden_dim), dtype) * 0.05
    b1 = jax.random.normal(ks[1], (num_steps, hidden_dim), dtype) * 0.05
    w2 = jax.random.normal(ks[2], (num_steps, hidden_dim, target_dim), dtype) * 0.05
    b2 = jax.random.normal(ks[3], (num_steps, target_dim), dtype) * 0.05
    return w1, b1, w2, b2


def reference_forward(c, w1, b1, w2, b2):
    """Pure-JAX reference matching the PyTorch module semantics (stacked)."""
    last_c = c[:, -1, :]
    preds = []
    for s in range(w1.shape[0]):
        h = jnp.maximum(last_c @ w1[s] + b1[s], 0.0)
        preds.append(h @ w2[s] + b2[s])
    return jnp.stack(preds, axis=0)  # [num_steps, B, T]


if __name__ == "__main__":
    # Small shapes consistent with the module's forward.
    batch, seq = 2, 8
    context_dim, target_dim, hidden_dim, num_steps = 32, 16, 32, 5

    key = jax.random.PRNGKey(0)
    k_c, k_p = jax.random.split(key)
    c = jax.random.normal(k_c, (batch, seq, context_dim), jnp.float32)
    w1, b1, w2, b2 = init_params(k_p, context_dim, target_dim, hidden_dim, num_steps)

    # One-time packing (hoisted out of the per-call forward path).
    packed = pack_params(w1, b1, w2, b2)

    preds = prediction_network_forward(c, packed)
    preds = jax.block_until_ready(preds)

    # Correctness check against pure-JAX reference.
    refs = reference_forward(c, w1, b1, w2, b2)
    assert preds.shape == (num_steps, batch, target_dim)
    assert jnp.allclose(preds, refs, atol=1e-5, rtol=1e-5), "mismatch vs reference"

    # Per-step list (the PyTorch module's return type) is a trivial view of the stack.
    preds_list = list(preds)
    assert len(preds_list) == num_steps and preds_list[0].shape == (batch, target_dim)

    print("KERNEL_OK")
</pallas_src>

<mosaic_0001>
module attributes {stable_mosaic.version = 11 : i64} {
  func.func @_pred_kernel(%arg0: i32, %arg1: memref<2x32xf32, #tpu.memory_space<vmem>>, %arg2: memref<32x160xf32, #tpu.memory_space<vmem>>, %arg3: memref<1x160xf32, #tpu.memory_space<vmem>>, %arg4: memref<5x32x16xf32, #tpu.memory_space<vmem>>, %arg5: memref<1x80xf32, #tpu.memory_space<vmem>>, %arg6: memref<2x128xf32, #tpu.memory_space<vmem>>) attributes {dimension_semantics = [#tpu.dimension_semantics<parallel>], iteration_bounds = array<i64: 1>, scalar_prefetch = 0 : i64, scratch_operands = 0 : i64, tpu.core_type = #tpu.core_type<tc>, window_params = [{transform_indices = @transform_0, window_bounds = array<i64: 2, 32>}, {pipeline_mode = #tpu.pipeline_mode<synchronous>, transform_indices = @transform_1, window_bounds = array<i64: 32, 160>}, {pipeline_mode = #tpu.pipeline_mode<synchronous>, transform_indices = @transform_2, window_bounds = array<i64: 1, 160>}, {pipeline_mode = #tpu.pipeline_mode<synchronous>, transform_indices = @transform_3, window_bounds = array<i64: 5, 32, 16>}, {pipeline_mode = #tpu.pipeline_mode<synchronous>, transform_indices = @transform_4, window_bounds = array<i64: 1, 80>}, {transform_indices = @transform_5, window_bounds = array<i64: 2, 128>}]} {
    %c0 = arith.constant 0 : index
    %c0_0 = arith.constant 0 : index
    %0 = vector.load %arg1[%c0, %c0_0] : memref<2x32xf32, #tpu.memory_space<vmem>>, vector<2x32xf32>
    %c0_1 = arith.constant 0 : index
    %c0_2 = arith.constant 0 : index
    %1 = vector.load %arg2[%c0_1, %c0_2] : memref<32x160xf32, #tpu.memory_space<vmem>>, vector<32x160xf32>
    %cst = arith.constant dense<0.000000e+00> : vector<2x160xf32>
    %2 = tpu.matmul %0, %1, %cst {dimension_numbers = #tpu.dot_dimension_numbers<[1], [0], [0], [1], [0, 0, 1, 1], [], []>} : vector<2x32xf32>, vector<32x160xf32>, vector<2x160xf32> -> vector<2x160xf32>
    %c0_3 = arith.constant 0 : index
    %c0_4 = arith.constant 0 : index
    %3 = vector.load %arg3[%c0_3, %c0_4] : memref<1x160xf32, #tpu.memory_space<vmem>>, vector<1x160xf32>
    %4 = vector.broadcast %3 : vector<1x160xf32> to vector<2x160xf32>
    %5 = arith.addf %2, %4 : vector<2x160xf32>
    %cst_5 = arith.constant 0.000000e+00 : f32
    %6 = vector.broadcast %cst_5 : f32 to vector<2x160xf32>
    %7 = arith.maximumf %5, %6 : vector<2x160xf32>
    %8 = vector.extract_strided_slice %7 {offsets = [0, 0], sizes = [2, 32], strides = [1, 1]} : vector<2x160xf32> to vector<2x32xf32>
    %c0_6 = arith.constant 0 : index
    %c0_7 = arith.constant 0 : index
    %c0_8 = arith.constant 0 : index
    %9 = vector.load %arg4[%c0_6, %c0_7, %c0_8] : memref<5x32x16xf32, #tpu.memory_space<vmem>>, vector<1x32x16xf32>
    %10 = vector.shape_cast %9 : vector<1x32x16xf32> to vector<32x16xf32>
    %cst_9 = arith.constant dense<0.000000e+00> : vector<2x16xf32>
    %11 = tpu.matmul %8, %10, %cst_9 {dimension_numbers = #tpu.dot_dimension_numbers<[1], [0], [0], [1], [0, 0, 1, 1], [], []>} : vector<2x32xf32>, vector<32x16xf32>, vector<2x16xf32> -> vector<2x16xf32>
    %12 = vector.extract_strided_slice %7 {offsets = [0, 32], sizes = [2, 32], strides = [1, 1]} : vector<2x160xf32> to vector<2x32xf32>
    %c1 = arith.constant 1 : index
    %c0_10 = arith.constant 0 : index
    %c0_11 = arith.constant 0 : index
    %13 = vector.load %arg4[%c1, %c0_10, %c0_11] : memref<5x32x16xf32, #tpu.memory_space<vmem>>, vector<1x32x16xf32>
    %14 = vector.shape_cast %13 : vector<1x32x16xf32> to vector<32x16xf32>
    %cst_12 = arith.constant dense<0.000000e+00> : vector<2x16xf32>
    %15 = tpu.matmul %12, %14, %cst_12 {dimension_numbers = #tpu.dot_dimension_numbers<[1], [0], [0], [1], [0, 0, 1, 1], [], []>} : vector<2x32xf32>, vector<32x16xf32>, vector<2x16xf32> -> vector<2x16xf32>
    %16 = vector.extract_strided_slice %7 {offsets = [0, 64], sizes = [2, 32], strides = [1, 1]} : vector<2x160xf32> to vector<2x32xf32>
    %c2 = arith.constant 2 : index
    %c0_13 = arith.constant 0 : index
    %c0_14 = arith.constant 0 : index
    %17 = vector.load %arg4[%c2, %c0_13, %c0_14] : memref<5x32x16xf32, #tpu.memory_space<vmem>>, vector<1x32x16xf32>
    %18 = vector.shape_cast %17 : vector<1x32x16xf32> to vector<32x16xf32>
    %cst_15 = arith.constant dense<0.000000e+00> : vector<2x16xf32>
    %19 = tpu.matmul %16, %18, %cst_15 {dimension_numbers = #tpu.dot_dimension_numbers<[1], [0], [0], [1], [0, 0, 1, 1], [], []>} : vector<2x32xf32>, vector<32x16xf32>, vector<2x16xf32> -> vector<2x16xf32>
    %20 = vector.extract_strided_slice %7 {offsets = [0, 96], sizes = [2, 32], strides = [1, 1]} : vector<2x160xf32> to vector<2x32xf32>
    %c3 = arith.constant 3 : index
    %c0_16 = arith.constant 0 : index
    %c0_17 = arith.constant 0 : index
    %21 = vector.load %arg4[%c3, %c0_16, %c0_17] : memref<5x32x16xf32, #tpu.memory_space<vmem>>, vector<1x32x16xf32>
    %22 = vector.shape_cast %21 : vector<1x32x16xf32> to vector<32x16xf32>
    %cst_18 = arith.constant dense<0.000000e+00> : vector<2x16xf32>
    %23 = tpu.matmul %20, %22, %cst_18 {dimension_numbers = #tpu.dot_dimension_numbers<[1], [0], [0], [1], [0, 0, 1, 1], [], []>} : vector<2x32xf32>, vector<32x16xf32>, vector<2x16xf32> -> vector<2x16xf32>
    %24 = vector.extract_strided_slice %7 {offsets = [0, 128], sizes = [2, 32], strides = [1, 1]} : vector<2x160xf32> to vector<2x32xf32>
    %c4 = arith.constant 4 : index
    %c0_19 = arith.constant 0 : index
    %c0_20 = arith.constant 0 : index
    %25 = vector.load %arg4[%c4, %c0_19, %c0_20] : memref<5x32x16xf32, #tpu.memory_space<vmem>>, vector<1x32x16xf32>
    %26 = vector.shape_cast %25 : vector<1x32x16xf32> to vector<32x16xf32>
    %cst_21 = arith.constant dense<0.000000e+00> : vector<2x16xf32>
    %27 = tpu.matmul %24, %26, %cst_21 {dimension_numbers = #tpu.dot_dimension_numbers<[1], [0], [0], [1], [0, 0, 1, 1], [], []>} : vector<2x32xf32>, vector<32x16xf32>, vector<2x16xf32> -> vector<2x16xf32>
    %28 = tpu.concatenate %11, %15, %19, %23, %27 in 1 : vector<2x16xf32>, vector<2x16xf32>, vector<2x16xf32>, vector<2x16xf32>, vector<2x16xf32> -> vector<2x80xf32>
    %c0_22 = arith.constant 0 : index
    %c0_23 = arith.constant 0 : index
    %29 = vector.load %arg5[%c0_22, %c0_23] : memref<1x80xf32, #tpu.memory_space<vmem>>, vector<1x80xf32>
    %30 = vector.broadcast %29 : vector<1x80xf32> to vector<2x80xf32>
    %31 = arith.addf %28, %30 : vector<2x80xf32>
    %cst_24 = arith.constant 0.000000e+00 : f32
    %32 = vector.broadcast %cst_24 : f32 to vector<2x48xf32>
    %33 = tpu.concatenate %31, %32 in 1 : vector<2x80xf32>, vector<2x48xf32> -> vector<2x128xf32>
    %c0_25 = arith.constant 0 : index
    %c0_26 = arith.constant 0 : index
    %34 = vector.load %arg6[%c0_25, %c0_26] : memref<2x128xf32, #tpu.memory_space<vmem>>, vector<2x128xf32>
    tpu.vector_store %arg6[%c0_25, %c0_26], %33 {strides = array<i32>} : memref<2x128xf32, #tpu.memory_space<vmem>>, vector<2x128xf32>,
    return
  }
  func.func @transform_0(%arg0: i32) -> (i32, i32) {
    %c0_i32 = arith.constant 0 : i32
    %c0_i32_0 = arith.constant 0 : i32
    return %arg0, %c0_i32 : i32, i32
  }
  func.func @transform_1(%arg0: i32) -> (i32, i32) {
    %c0_i32 = arith.constant 0 : i32
    %c0_i32_0 = arith.constant 0 : i32
    %c0_i32_1 = arith.constant 0 : i32
    return %c0_i32, %c0_i32_0 : i32, i32
  }
  func.func @transform_2(%arg0: i32) -> (i32, i32) {
    %c0_i32 = arith.constant 0 : i32
    %c0_i32_0 = arith.constant 0 : i32
    %c0_i32_1 = arith.constant 0 : i32
    return %c0_i32, %c0_i32_0 : i32, i32
  }
  func.func @transform_3(%arg0: i32) -> (i32, i32, i32) {
    %c0_i32 = arith.constant 0 : i32
    %c0_i32_0 = arith.constant 0 : i32
    %c0_i32_1 = arith.constant 0 : i32
    %c0_i32_2 = arith.constant 0 : i32
    return %c0_i32, %c0_i32_0, %c0_i32_1 : i32, i32, i32
  }
  func.func @transform_4(%arg0: i32) -> (i32, i32) {
    %c0_i32 = arith.constant 0 : i32
    %c0_i32_0 = arith.constant 0 : i32
    %c0_i32_1 = arith.constant 0 : i32
    return %c0_i32, %c0_i32_0 : i32, i32
  }
  func.func @transform_5(%arg0: i32) -> (i32, i32) {
    %c0_i32 = arith.constant 0 : i32
    %c0_i32_0 = arith.constant 0 : i32
    return %arg0, %c0_i32 : i32, i32
  }
}

</mosaic_0001>

<bundles_post_ra>
// kernel: tpu_custom_call.1
= control target key start
LH: loop header
LB: loop body
LE: loop exit
PB: predicated region body
PF: predicated region fallthrough
CT: control target
= control target key end

     0   :  { %v733_v7 = vmov 0.0   ;;  %v734_v8 = vmov 0.0|0.0   ;;  %s909_s0 = inlined_call_operand.vmem [shape: f32[2,32], index: 0, kind: input, shape index: {}]   ;;  %s910_s1 = inlined_call_operand.vmem [shape: f32[32,160], index: 1, kind: input, shape index: {}]   ;;  %s911_s2 = inlined_call_operand.vmem [shape: f32[1,160], index: 2, kind: input, shape index: {}]   ;;  %s912_s3 = inlined_call_operand.vmem [shape: f32[5,32,16], index: 3, kind: input, shape index: {}]   ;;  %s913_s4 = inlined_call_operand.vmem [shape: f32[1,80], index: 4, kind: input, shape index: {}]   ;;  %s914_s5 = inlined_call_operand.hbm [shape: f32[2,128], index: 5, kind: output, shape index: {}]  }
   0x1   :  { %v23_v0 = vld [vmem:[%s910_s1 + $0x8] sm:$0xff]  ;;  %v25_v1 = vld [vmem:[%s910_s1 + $0x18] sm:$0xff]  ;;  %v22_v2 = vld [vmem:[%s910_s1] sm:$0xff]  ;;  %110 = vmatprep.mubr.f32.mxu0 %v733_v7  ;;  %670 = vmatprep.subr.bf16.mxu1 %v734_v8 }
   0x2   :  { %v662_v3 = vpack.c.bf16 %v25_v1, %v23_v0  ;;  %v24_v4 = vld [vmem:[%s910_s1 + $0x10] sm:$0xff]  ;;  %v27_v5 = vld [vmem:[%s910_s1 + $0x28] sm:$0xff]  ;;  %v29_v6 = vld [vmem:[%s910_s1 + $0x38] sm:$0xff] }
   0x3   :  { %v664_v9 = vpack.c.bf16 %v24_v4, %v22_v2  ;;  %v666_v10 = vpack.c.bf16 %v29_v6, %v27_v5  ;;  %v26_v11 = vld [vmem:[%s910_s1 + $0x20] sm:$0xff]  ;;  %v28_v12 = vld [vmem:[%s910_s1 + $0x30] sm:$0xff]  ;;  %v120_v14 = vld [vmem:[%s912_s3 + $0x8] sm:$0xff] }
   0x4   :  { %663 = vmatprep.subr.bf16.mxu0 %v662_v3  ;;  %v119_v13 = vld [vmem:[%s912_s3] sm:$0xff]  ;;  %v668_v15 = vpack.c.bf16 %v28_v12, %v26_v11 }
   0x5   :  { %665 = vmatpush1.bf16.msra.mxu0 %v664_v9  ;;  %v671_v16 = vpack.c.bf16 %v120_v14, %v119_v13 }
   0x6   :  { %10 = vsyncpa [#allocation3], 0  ;;  %667 = vmatprep.subr.bf16.mxu0 %v666_v10  ;;  %v21_v17 = vld [vmem:[%s909_s0] sm:$0x3]  ;;  %vm42_vm0 = vcmask 261120   ;;  %v121_v18 = vld [vmem:[%s912_s3 + $0x10] sm:$0xff]  ;;  %v32_v27 = vlaneseq }
   0x7   :  { %672 = vmatpush3.bf16.msra.mxu1 %v671_v16  ;;  %v122_v19 = vld [vmem:[%s912_s3 + $0x18] sm:$0xff]  ;;  %vm735_vm1 = vmmov 0   ;;  %v561_v21 = vld [vmem:[%s912_s3 + $0x20] sm:$0xff]  ;;  %v562_v22 = vld [vmem:[%s912_s3 + $0x28] sm:$0xff]  ;;  %s736_s9 = smov 32   ;;  %s737_s10 = smov 96  }
   0x8   :  { %673 = vmatprep.subr.bf16.mxu1 %v734_v8  ;;  %v674_v20 = vpack.c.bf16 %v122_v19, %v121_v18  ;;  %615 = vmatprep.mubr.msk.f32.mxu1 %vm735_vm1, %v733_v7  ;;  %v563_v23 = vld [vmem:[%s912_s3 + $0x30] sm:$0xff]  ;;  %v677_v24 = vpack.c.bf16 %v562_v22, %v561_v21  ;;  %v564_v25 = vld [vmem:[%s912_s3 + $0x38] sm:$0xff]  ;;  %v33_v28 = vshrl.u32 %v32_v27, 7  ;;  %v30_v30 = vld [vmem:[%s911_s2] sm:$0x3]  ;;  %s738_s11 = smov 64  }
   0x9   :  { %669 = vmatpush1.bf16.msra.mxu0 %v668_v15  ;;  %v680_v26 = vpack.c.bf16 %v564_v25, %v563_v23  ;;  %v566_v33 = vld [vmem:[%s912_s3 + $0x40] sm:$0xff]  ;;  %v567_v34 = vld [vmem:[%s912_s3 + $0x48] sm:$0xff]  ;;  %v568_v39 = vld [vmem:[%s912_s3 + $0x50] sm:$0xff]  ;;  %s740_s26 = smov 48   ;;  %vm527_vm2 = vcmask 130048   ;;  %vm530_vm3 = vcmask 392192  }
   0xa   :  { %676 = vmatprep.subr.bf16.mxu0 %v734_v8  ;;  %v34_v29 = vsub.s32 0, %v33_v28  ;;  %v683_v38 = vpack.c.bf16 %v567_v34, %v566_v33  ;;  %v569_v40 = vld [vmem:[%s912_s3 + $0x58] sm:$0xff]  ;;  %v571_v42 = vld [vmem:[%s912_s3 + $0x60] sm:$0xff]  ;;  %v572_v43 = vld [vmem:[%s912_s3 + $0x68] sm:$0xff]  ;;  %v38_v46 = vsub.s32 1, %v33_v28  ;;  %vm532_vm4 = vcmask 523264  }
   0xb   :  { %675 = vmatpush3.bf16.msra.mxu1 %v674_v20  ;;  %v686_v41 = vpack.c.bf16 %v569_v40, %v568_v39  ;;  %v689_v44 = vpack.c.bf16 %v572_v43, %v571_v42  ;;  %v573_v45 = vld [vmem:[%s912_s3 + $0x70] sm:$0xff]  ;;  %v574_v47 = vld [vmem:[%s912_s3 + $0x78] sm:$0xff]  ;;  %v576_v48 = vld [vmem:[%s912_s3 + $0x80] sm:$0xff]  ;;  %s741_s29 = smov [#allocation2]   ;;  %vm542_vm5 = vcmask 654336  }
   0xc   :  { %559 = vmatmul.mubr.msk.f32.vlgmr.msra.gmra.mrb[0].mxu0 %vm42_vm0, %v21_v17  ;;  %682 = vmatprep.subr.bf16.mxu1 %v734_v8  ;;  %v35_v31 = vrot.slane %v30_v30, %v34_v29  ;;  %v577_v49 = vld [vmem:[%s912_s3 + $0x88] sm:$0xff]  ;;  %v692_v51 = vpack.c.bf16 %v574_v47, %v573_v45  ;;  %v39_v53 = vrot.slane %v30_v30, %v38_v46  ;;  %v578_v54 = vld [vmem:[%s912_s3 + $0x90] sm:$0xff]  ;;  %v579_v55 = vld [vmem:[%s912_s3 + $0x98] sm:$0xff]  ;;  %s739_s3 = smov 16   ;;  %s551_s30 = sshll.u32 %s741_s29, 4  ;;  %s552_s30 = int_to_ptr.vmem [resolvable:$true] %s551_s30 }
   0xd   :  { %626 = vmatprep.mubr.msk.f32.mxu0 %vm735_vm1, %v733_v7  ;;  %678 = vmatpush3.bf16.msra.mxu0 %v677_v24  ;;  %v695_v52 = vpack.c.bf16 %v577_v49, %v576_v48  ;;  %v698_v57 = vpack.c.bf16 %v579_v55, %v578_v54  ;;  %v581_v12 = vld [vmem:[%s913_s4] ss:$0 sm:$0xff]  ;;  %s709_s6 = scalar_lea.vmem %s552_s30, 32  ;;  %p714_p1 = scmp.lt.s32.totalorder %s552_s30, %s552_s30 }
   0xe   :  { %679 = vmatprep.subr.bf16.mxu0 %v734_v8  ;;  %p710_p0 = scmp.ne.s32.totalorder %s552_s30, %s709_s6  ;;  %p715_p2 = scmp.lt.s32.totalorder %s709_s6, %s709_s6 }
  0x10   :  { %p716_p3 = por %p715_p2, %p714_p1 }
  0x11   :  { %681 = vmatpush3.bf16.msra.mxu0 %v680_v26 }
  0x12   :  { %688 = vmatprep.subr.bf16.mxu0 %v734_v8  ;;  %p717_p4 = pnand %p716_p3, %p710_p0 }
  0xdf   :  { %v112_v32 = vpop.f32.mrb[0].mxu0 }
  0xe0   :  { %v113_v35 = vadd.f32 %v112_v32, %v35_v31  ;;  %v114_v36 = vpop.f32.mrb[1].mxu0 }
  0xe1   :  { %v115_v58 = vadd.f32 %v114_v36, %v39_v53 }
  0xe2   :  { %v117_v37 = vmax.f32 %v113_v35, 0.0 }
  0xe3   :  { %v118_v60 = vmax.f32 %v115_v58, 0.0 }
  0xe4   :  { %359 = vrot.lane.b32.xlu1 %v117_v37, %s736_s9  ;;  %201 = vrot.lane.b32.xlu0 %v117_v37, %s737_s10 }
  0xe5   :  { %616 = vmatmul.mubr.msk.f32.vlgmr.msra.gmra.mrb[0].mxu1 %vm42_vm0, %v117_v37 }
  0xe6   :  { %684 = vmatpush3.bf16.msra.mxu1 %v683_v38  ;;  %637 = vmatprep.mubr.msk.f32.mxu1 %vm735_vm1, %v733_v7 }
  0xe7   :  { %685 = vmatprep.subr.bf16.mxu1 %v734_v8 }
  0xe8   :  { %280 = vrot.lane.b32.xlu0 %v117_v37, %s738_s11 }
  0xea   :  { %687 = vmatpush3.bf16.msra.mxu1 %v686_v41 }
  0xeb   :  { %694 = vmatprep.subr.bf16.mxu1 %v734_v8 }
 0x156   :  { %v202_v50 = vpop.permute.xlu0 %201  ;;  %v360_v59 = vpop.permute.xlu1 %359 }
 0x157   :  { %627 = vmatmul.mubr.msk.f32.vlgmr.msra.gmra.mrb[2].mxu0 %vm42_vm0, %v202_v50 }
 0x158   :  { %690 = vmatpush3.bf16.msra.mxu0 %v689_v44  ;;  %648 = vmatprep.mubr.msk.f32.mxu0 %vm735_vm1, %v733_v7 }
 0x159   :  { %691 = vmatprep.subr.bf16.mxu0 %v734_v8 }
 0x15a   :  { %v281_v56 = vpop.permute.xlu0 %280 }
 0x15b   :  { %638 = vmatmul.mubr.msk.f32.vlgmr.msra.gmra.mrb[2].mxu1 %vm42_vm0, %v281_v56 }
 0x15c   :  { %693 = vmatpush3.bf16.msra.mxu0 %v692_v51  ;;  %696 = vmatpush3.bf16.msra.mxu1 %v695_v52 }
 0x15d   :  { %697 = vmatprep.subr.bf16.mxu1 %v734_v8  ;;  %659 = vmatprep.mubr.msk.f32.mxu1 %vm735_vm1, %v733_v7 }
 0x15f   :  { %649 = vmatmul.mubr.msk.f32.vlgmr.msra.gmra.mrb[4].mxu0 %vm42_vm0, %v360_v59 }
 0x160   :  { %699 = vmatpush3.bf16.msra.mxu1 %v698_v57 }
 0x163   :  { %660 = vmatmul.mubr.msk.f32.vlgmr.msra.gmra.mrb[4].mxu1 %vm42_vm0, %v118_v60 }
 0x1b8   :  { %v192_v61 = vpop.f32.mrb[0].mxu1 }
 0x1b9   :  { %v617_v62 = vpop.f32.mrb[1].mxu1 }
 0x22a   :  { %v271_v63 = vpop.f32.mrb[2].mxu0 }
 0x22b   :  { %512 = vrot.lane.b32.xlu1 %v271_v63, %s739_s3  ;;  %v628_v0 = vpop.f32.mrb[3].mxu0 }
 0x22e   :  { %v350_v1 = vpop.f32.mrb[2].mxu1 }
 0x22f   :  { %516 = vrot.lane.b32.xlu0 %v350_v1, %s736_s9  ;;  %v639_v2 = vpop.f32.mrb[3].mxu1 }
 0x232   :  { %v429_v3 = vpop.f32.mrb[4].mxu0 }
 0x233   :  { %520 = vrot.lane.b32.xlu1 %v429_v3, %s740_s26  ;;  %v650_v4 = vpop.f32.mrb[5].mxu0 }
 0x236   :  { %v507_v5 = vpop.f32.mrb[4].mxu1 }
 0x237   :  { %524 = vrot.lane.b32.xlu0 %v507_v5, %s738_s11  ;;  %v661_v6 = vpop.f32.mrb[5].mxu1 }
 0x29d   :  { %v513_v7 = vpop.permute.xlu1 %512 }
 0x29e   :  { %v528_v10 = vsel %vm527_vm2, %v192_v61, %v513_v7 }
 0x2a1   :  { %v517_v8 = vpop.permute.xlu0 %516 }
 0x2a2   :  { %v529_v11 = vsel %vm42_vm0, %v528_v10, %v517_v8 }
 0x2a5   :  { %v521_v9 = vpop.permute.xlu1 %520 }
 0x2a6   :  { %v531_v13 = vsel %vm530_vm3, %v529_v11, %v521_v9 }
 0x2a9   :  { %v525_v14 = vpop.permute.xlu0 %524 }
 0x2aa   :  { %v533_v15 = vsel %vm532_vm4, %v531_v13, %v525_v14 }
 0x2ab   :  { %v541_v16 = vadd.f32 %v581_v12, %v533_v15 }
 0x2ad   :  { %v543_v17 = vsel %vm542_vm5, %v541_v16, 0.0 }
 0x2ae   :  { %544 = vst [vmem:[#allocation2] sm:$0x3] %v543_v17 }
 0x2af   :  { %720 = shalt.err (!%p717_p4)
}
 0x2b0   :  { %s721_s4 = scalar_lea.hbm %s914_s5, 32 }
 0x2b1   :  { %p722_p5 = scmp.ne.s32.totalorder %s914_s5, %s721_s4  ;;  %p725_p6 = scmp.lt.u32.totalorder %s721_s4, %s914_s5 }
 0x2b3   :  { %p727_p7 = pnand %p725_p6, %p722_p5 }
 0x2b5   :  { %730 = shalt.err (!%p727_p7)
}
 0x2b6   :  { %554 = dma.vmem_to_hbm [thread:$0]  %s552_s30, 32, %s914_s5, [#allocation3]  }
 0x2b7   :  { %731 = dma.done.wait [#allocation3], 32  }
 0x2b8   :  { %732 = vsyncadd [#allocation3], 4294967264 }
 0x2b9   :  { %558 = vsyncpa [#allocation3], 1 }

</bundles_post_ra>
